<compile_context>
chip_gen: v7x
topology: tpu7x:2x2x1
jax: 0.10.0
libtpu: 0.0.40
codegen_flags: <defaults>
</compile_context>

<pallas_src>
import functools

import jax
import jax.numpy as jnp
from jax.experimental import pallas as pl
from jax.experimental.pallas import tpu as pltpu


# ---------------------------------------------------------------------------
# Kernels
# ---------------------------------------------------------------------------

def feat_transform_kernel(x_ref, w_ref, o_ref):
    """xw = h @ W_pad for one tile of node rows (f32 matmul, bf16 output)."""
    o_ref[...] = jnp.dot(
        x_ref[...], w_ref[...], preferred_element_type=jnp.float32
    ).astype(o_ref.dtype)


def aggregate_kernel(adj_ref, xw_ref, b_ref, o_ref, acc_ref, *, apply_relu):
    """out[i-tile] = act( sum_k adj_norm[i-tile, k-tile] @ xw[k-tile] + b ).

    Grid = (row tiles ["parallel"], adjacency-column tiles ["arbitrary"]).
    bf16 MXU operands, f32 accumulator; bias + activation fused at the last
    K step; lane-dense (multiple-of-128) output block -> unmasked stores.
    """
    @pl.when(pl.program_id(1) == 0)
    def _():
        acc_ref[...] = jnp.zeros_like(acc_ref)

    acc_ref[...] += jnp.dot(adj_ref[...], xw_ref[...],
                            preferred_element_type=jnp.float32)

    @pl.when(pl.program_id(1) == pl.num_programs(1) - 1)
    def _():
        r = acc_ref[...] + b_ref[...]
        if apply_relu:
            r = jnp.maximum(r, 0.0)
        o_ref[...] = r.astype(o_ref.dtype)


# ---------------------------------------------------------------------------
# Pallas wrappers
# ---------------------------------------------------------------------------

def feat_transform(h, w_pad, *, tm=128):
    """(N, d_in) f32 @ (d_in, d_out_p) f32 -> (N, d_out_p) bf16."""
    N, d_in = h.shape
    d_out_p = w_pad.shape[1]
    tm = min(tm, N)
    assert N % tm == 0 and tm % 8 == 0 and d_out_p % 128 == 0

    return pl.pallas_call(
        feat_transform_kernel,
        out_shape=jax.ShapeDtypeStruct((N, d_out_p), jnp.bfloat16),
        grid_spec=pltpu.PrefetchScalarGridSpec(
            num_scalar_prefetch=0,
            grid=(N // tm,),
            in_specs=[
                pl.BlockSpec((tm, d_in), lambda i: (i, 0)),       # node rows
                pl.BlockSpec((d_in, d_out_p), lambda i: (0, 0)),  # padded W
            ],
            out_specs=pl.BlockSpec((tm, d_out_p), lambda i: (i, 0)),
        ),
        compiler_params=pltpu.CompilerParams(
            dimension_semantics=("parallel",)),
    )(h, w_pad)


def aggregate(adj_norm_bf16, xw_bf16, b_pad, *, relu, tn=128, tk=128):
    """adj_norm (N,N) bf16 @ xw (N, d_out_p) bf16 + b, optional ReLU -> f32."""
    N = adj_norm_bf16.shape[0]
    d_out_p = xw_bf16.shape[1]
    tn = min(tn, N)
    tk = min(tk, N)
    assert N % tn == 0 and N % tk == 0
    assert tn % 8 == 0 and tk % 128 == 0 and d_out_p % 128 == 0

    b2 = b_pad.reshape(1, d_out_p)

    return pl.pallas_call(
        functools.partial(aggregate_kernel, apply_relu=relu),
        out_shape=jax.ShapeDtypeStruct((N, d_out_p), jnp.float32),
        grid_spec=pltpu.PrefetchScalarGridSpec(
            num_scalar_prefetch=0,
            grid=(N // tn, N // tk),
            in_specs=[
                pl.BlockSpec((tn, tk), lambda i, k: (i, k)),       # adj tile
                pl.BlockSpec((tk, d_out_p), lambda i, k: (k, 0)),  # xw K-slab
                pl.BlockSpec((1, d_out_p), lambda i, k: (0, 0)),   # bias
            ],
            out_specs=pl.BlockSpec((tn, d_out_p), lambda i, k: (i, 0)),
            scratch_shapes=[pltpu.VMEM((tn, d_out_p), jnp.float32)],
        ),
        # Row axis has no cross-step state -> "parallel" (megacore / v7x 2 TC);
        # K axis carries the accumulator -> "arbitrary".
        # (vmem_limit_bytes left at default; footprint here is tiny.)
        compiler_params=pltpu.CompilerParams(
            dimension_semantics=("parallel", "arbitrary")),
    )(adj_norm_bf16, xw_bf16, b2)


# ---------------------------------------------------------------------------
# Parameter / graph construction and forward pass (plain JAX glue)
# ---------------------------------------------------------------------------

def _round_up(x, m):
    return (x + m - 1) // m * m


def xavier_uniform(key, fan_in, fan_out):
    bound = jnp.sqrt(6.0 / (fan_in + fan_out))
    return jax.random.uniform(key, (fan_in, fan_out), jnp.float32,
                              minval=-bound, maxval=bound)


def init_gcn_params(key, in_feats, n_hidden, n_classes, n_layers):
    dims = [in_feats] + [n_hidden] * (n_layers - 1) + [n_classes]
    params = []
    for li in range(n_layers):
        key, sub = jax.random.split(key)
        w = xavier_uniform(sub, dims[li], dims[li + 1])
        b = jnp.zeros((dims[li + 1],), jnp.float32)
        params.append((w, b))
    return params


def gcn_forward(adj, norm, features, params, *, tm=128, tn=128, tk=128):
    """h = features; per layer: dropout(identity) -> GraphConv."""
    N = adj.shape[0]
    norm0 = norm[0]
    # Fold norm[0] into the adjacency once: adj @ diag(norm0) == adj * norm0.T.
    # Reused by every layer; cast to bf16 for the MXU (accumulation stays f32).
    adj_norm = (adj * norm0.reshape(1, N)).astype(jnp.bfloat16)

    h = features                       # (N, in_feats) f32
    n_layers = len(params)
    last_d_out = params[-1][0].shape[1]
    for li, (w, b) in enumerate(params):
        d_in, d_out = w.shape
        d_out_p = _round_up(d_out, 128)
        d_in_actual = h.shape[1]       # padded width of the incoming h
        # Zero-pad W / bias so the layer output is lane-dense (mult. of 128).
        # Pad columns of h stay exactly 0 through bias (0) + ReLU.
        w_pad = jnp.zeros((d_in_actual, d_out_p), jnp.float32)
        w_pad = w_pad.at[:d_in, :d_out].set(w)
        b_pad = jnp.zeros((d_out_p,), jnp.float32).at[:d_out].set(b)

        xw = feat_transform(h, w_pad, tm=tm)                    # (N, d_out_p) bf16
        h = aggregate(adj_norm, xw, b_pad,
                      relu=(li != n_layers - 1), tn=tn, tk=tk)  # (N, d_out_p) f32
    return h[:, :last_d_out]


def gcn_forward_ref(adj, norm, features, params):
    h = features
    n_layers = len(params)
    for li, (w, b) in enumerate(params):
        h = adj @ ((h * norm[0]) @ w) + b[None, :]
        if li != n_layers - 1:
            h = jnp.maximum(h, 0.0)
    return h


if __name__ == "__main__":
    N = 128          # number of graph nodes
    in_feats = 32
    n_hidden = 64
    n_classes = 16
    n_layers = 3

    key = jax.random.PRNGKey(0)
    k_feat, k_adj, k_param = jax.random.split(key, 3)

    # Node features.
    features = jax.random.normal(k_feat, (N, in_feats), jnp.float32)

    # Deterministic dense adjacency (0/1 pattern, ~10% density) + self loops.
    a = (jax.random.uniform(k_adj, (N, N)) < 0.1).astype(jnp.float32)
    adj = jnp.maximum(a, jnp.eye(N, dtype=jnp.float32))

    # Symmetric-style normalization vector, shape (N, 1) as in DGL GraphConv.
    deg = jnp.sum(adj, axis=1, keepdims=True)
    norm0 = 1.0 / jnp.sqrt(deg)
    norm = (norm0, norm0)   # norm[1] is a dead store in the PyTorch forward

    params = init_gcn_params(k_param, in_feats, n_hidden, n_classes, n_layers)

    out = gcn_forward(adj, norm, features, params)
    out = jax.block_until_ready(out)

    ref = gcn_forward_ref(adj, norm, features, params)
    assert out.shape == (N, n_classes)
    # bf16 MXU operands (adj_norm, xw) with f32 accumulation -> slightly looser
    # tolerance than a pure-f32 pipeline.
    assert jnp.allclose(out, ref, atol=5e-2, rtol=5e-2)

    print("KERNEL_OK")
</pallas_src>

<mosaic_0001>
module attributes {stable_mosaic.version = 11 : i64} {
  func.func @feat_transform_kernel(%arg0: i32, %arg1: memref<128x32xf32, #tpu.memory_space<vmem>>, %arg2: memref<32x128xf32, #tpu.memory_space<vmem>>, %arg3: memref<128x128xbf16, #tpu.memory_space<vmem>>) attributes {dimension_semantics = [#tpu.dimension_semantics<parallel>], iteration_bounds = array<i64: 1>, scalar_prefetch = 0 : i64, scratch_operands = 0 : i64, tpu.core_type = #tpu.core_type<tc>, window_params = [{transform_indices = @transform_0, window_bounds = array<i64: 128, 32>}, {pipeline_mode = #tpu.pipeline_mode<synchronous>, transform_indices = @transform_1, window_bounds = array<i64: 32, 128>}, {transform_indices = @transform_2, window_bounds = array<i64: 128, 128>}]} {
    %c0 = arith.constant 0 : index
    %c0_0 = arith.constant 0 : index
    %0 = vector.load %arg1[%c0, %c0_0] : memref<128x32xf32, #tpu.memory_space<vmem>>, vector<128x32xf32>
    %c0_1 = arith.constant 0 : index
    %c0_2 = arith.constant 0 : index
    %1 = vector.load %arg2[%c0_1, %c0_2] : memref<32x128xf32, #tpu.memory_space<vmem>>, vector<32x128xf32>
    %cst = arith.constant dense<0.000000e+00> : vector<128x128xf32>
    %2 = tpu.matmul %0, %1, %cst {dimension_numbers = #tpu.dot_dimension_numbers<[1], [0], [0], [1], [0, 0, 1, 1], [], []>} : vector<128x32xf32>, vector<32x128xf32>, vector<128x128xf32> -> vector<128x128xf32>
    %3 = arith.truncf %2 : vector<128x128xf32> to vector<128x128xbf16>
    %c0_3 = arith.constant 0 : index
    %c0_4 = arith.constant 0 : index
    %4 = vector.load %arg3[%c0_3, %c0_4] : memref<128x128xbf16, #tpu.memory_space<vmem>>, vector<128x128xbf16>
    tpu.vector_store %arg3[%c0_3, %c0_4], %3 {strides = array<i32>} : memref<128x128xbf16, #tpu.memory_space<vmem>>, vector<128x128xbf16>,
    return
  }
  func.func @transform_0(%arg0: i32) -> (i32, i32) {
    %c0_i32 = arith.constant 0 : i32
    %c0_i32_0 = arith.constant 0 : i32
    return %arg0, %c0_i32 : i32, i32
  }
  func.func @transform_1(%arg0: i32) -> (i32, i32) {
    %c0_i32 = arith.constant 0 : i32
    %c0_i32_0 = arith.constant 0 : i32
    %c0_i32_1 = arith.constant 0 : i32
    return %c0_i32, %c0_i32_0 : i32, i32
  }
  func.func @transform_2(%arg0: i32) -> (i32, i32) {
    %c0_i32 = arith.constant 0 : i32
    %c0_i32_0 = arith.constant 0 : i32
    return %arg0, %c0_i32 : i32, i32
  }
}

</mosaic_0001>

<bundles_post_ra>
// kernel: tpu_custom_call.1
= control target key start
LH: loop header
LB: loop body
LE: loop exit
PB: predicated region body
PF: predicated region fallthrough
CT: control target
= control target key end

     0   :  { %vm32_vm0 = vcmask 261120   ;;  %s614_s0 = inlined_call_operand.vmem [shape: f32[128,32], index: 0, kind: input, shape index: {}]   ;;  %s615_s1 = inlined_call_operand.vmem [shape: f32[32,128], index: 1, kind: input, shape index: {}]   ;;  %s616_s2 = inlined_call_operand.hbm [shape: bf16[128,128], index: 2, kind: output, shape index: {}]  }
   0x1   :  { %v28_v0 = vld [vmem:[%s615_s1] sm:$0xff]  ;;  %v29_v1 = vld [vmem:[%s615_s1 + $0x8] sm:$0xff]  ;;  %v30_v2 = vld [vmem:[%s615_s1 + $0x10] sm:$0xff] }
   0x2   :  { %v469_v3 = vpack.c.bf16 %v29_v1, %v28_v0  ;;  %v31_v4 = vld [vmem:[%s615_s1 + $0x18] sm:$0xff]  ;;  %v12_v5 = vld [vmem:[%s614_s0] sm:$0xff] }
   0x3   :  { %v20_v6 = vld [vmem:[%s614_s0 + $0x40] sm:$0xff]  ;;  %v473_v7 = vpack.c.bf16 %v31_v4, %v30_v2  ;;  %445 = vmatprep.mubr.msk.f32.mxu0 %vm32_vm0, %v12_v5 }
   0x4   :  { %457 = vmatprep.mubr.msk.f32.mxu1 %vm32_vm0, %v20_v6  ;;  %470 = vmatprep.subr.bf16.mxu0 %v469_v3 }
   0x5   :  { %477 = vmatprep.subr.bf16.mxu1 %v469_v3  ;;  %472 = vmatpush3.bf16.msra.mxu0 %v469_v3 }
   0x6   :  { %479 = vmatpush3.bf16.msra.mxu1 %v469_v3  ;;  %474 = vmatprep.subr.bf16.mxu0 %v473_v7 }
   0x7   :  { %478 = vmatprep.subr.bf16.mxu1 %v473_v7 }
   0x8   :  { %7 = vsyncpa [#allocation3], 0  ;;  %v13_v8 = vld [vmem:[%s614_s0 + $0x8] sm:$0xff]  ;;  %v14_v10 = vld [vmem:[%s614_s0 + $0x10] sm:$0xff] }
   0x9   :  { %476 = vmatpush3.bf16.msra.mxu0 %v473_v7  ;;  %v21_v9 = vld [vmem:[%s614_s0 + $0x48] sm:$0xff]  ;;  %v22_v11 = vld [vmem:[%s614_s0 + $0x50] sm:$0xff]  ;;  %v15_v12 = vld [vmem:[%s614_s0 + $0x18] sm:$0xff] }
   0xa   :  { %480 = vmatpush3.bf16.msra.mxu1 %v473_v7  ;;  %v23_v13 = vld [vmem:[%s614_s0 + $0x58] sm:$0xff]  ;;  %v16_v14 = vld [vmem:[%s614_s0 + $0x20] sm:$0xff]  ;;  %v17_v16 = vld [vmem:[%s614_s0 + $0x28] sm:$0xff] }
   0xb   :  { %v24_v15 = vld [vmem:[%s614_s0 + $0x60] sm:$0xff]  ;;  %v25_v17 = vld [vmem:[%s614_s0 + $0x68] sm:$0xff]  ;;  %v18_v18 = vld [vmem:[%s614_s0 + $0x30] sm:$0xff] }
   0xc   :  { %446 = vmatmul.mubr.msk.f32.vlgmr.msra.gmra.mrb[0].mxu0 %vm32_vm0, %v13_v8  ;;  %v26_v19 = vld [vmem:[%s614_s0 + $0x70] sm:$0xff]  ;;  %v19_v20 = vld [vmem:[%s614_s0 + $0x38] sm:$0xff] }
   0xd   :  { %458 = vmatmul.mubr.msk.f32.vlgmr.msra.gmra.mrb[0].mxu1 %vm32_vm0, %v21_v9  ;;  %448 = vmatprep.mubr.msk.f32.mxu0 %vm32_vm0, %v14_v10  ;;  %v27_v21 = vld [vmem:[%s614_s0 + $0x78] sm:$0xff]  ;;  %s508_s0 = smov [#allocation2]  }
   0xe   :  { %460 = vmatprep.mubr.msk.f32.mxu1 %vm32_vm0, %v22_v11  ;;  %s311_s20 = sshll.u32 %s508_s0, 4  ;;  %s312_s20 = int_to_ptr.vmem [resolvable:$true] %s311_s20 }
   0xf   :  { %s484_s1 = scalar_lea.vmem %s312_s20, 1024  ;;  %p489_p1 = scmp.lt.s32.totalorder %s312_s20, %s312_s20 }
  0x10   :  { %449 = vmatmul.mubr.msk.f32.gmra.mrb[2].mxu0 %vm32_vm0, %v15_v12  ;;  %p485_p0 = scmp.ne.s32.totalorder %s312_s20, %s484_s1  ;;  %p490_p2 = scmp.lt.s32.totalorder %s484_s1, %s484_s1 }
  0x11   :  { %461 = vmatmul.mubr.msk.f32.gmra.mrb[2].mxu1 %vm32_vm0, %v23_v13  ;;  %451 = vmatprep.mubr.msk.f32.mxu0 %vm32_vm0, %v16_v14 }
  0x12   :  { %463 = vmatprep.mubr.msk.f32.mxu1 %vm32_vm0, %v24_v15  ;;  %p491_p3 = por %p490_p2, %p489_p1 }
  0x14   :  { %452 = vmatmul.mubr.msk.f32.gmra.mrb[4].mxu0 %vm32_vm0, %v17_v16  ;;  %p492_p4 = pnand %p491_p3, %p485_p0 }
  0x15   :  { %464 = vmatmul.mubr.msk.f32.gmra.mrb[4].mxu1 %vm32_vm0, %v25_v17  ;;  %454 = vmatprep.mubr.msk.f32.mxu0 %vm32_vm0, %v18_v18 }
  0x16   :  { %466 = vmatprep.mubr.msk.f32.mxu1 %vm32_vm0, %v26_v19 }
  0x18   :  { %455 = vmatmul.mubr.msk.f32.gmra.mrb[6].mxu0 %vm32_vm0, %v19_v20 }
  0x19   :  { %467 = vmatmul.mubr.msk.f32.gmra.mrb[6].mxu1 %vm32_vm0, %v27_v21 }
  0xdf   :  { %v447_v22 = vpop.f32.mrb[0].mxu0 }
  0xe0   :  { %v459_v23 = vpop.f32.mrb[0].mxu1  ;;  %v147_v24 = vpop.f32.mrb[1].mxu0 }
  0xe1   :  { %v187_v25 = vpop.f32.mrb[1].mxu1  ;;  %v373_v26 = vpack.c.bf16 %v447_v22, %v147_v24 }
  0xe2   :  { %v393_v27 = vpack.c.bf16 %v459_v23, %v187_v25 }
  0xe3   :  { %374 = vst [vmem:[#allocation2] sm:$0xff] %v373_v26   ;;  %v450_v28 = vpop.f32.mrb[2].mxu0 }
  0xe4   :  { %413 = vst [vmem:[#allocation2 + $0x20] sm:$0xff] %v393_v27   ;;  %v462_v29 = vpop.f32.mrb[2].mxu1  ;;  %v157_v30 = vpop.f32.mrb[3].mxu0 }
  0xe5   :  { %v197_v31 = vpop.f32.mrb[3].mxu1  ;;  %v378_v32 = vpack.c.bf16 %v450_v28, %v157_v30 }
  0xe6   :  { %v398_v33 = vpack.c.bf16 %v462_v29, %v197_v31 }
  0xe7   :  { %410 = vst [vmem:[#allocation2 + $0x8] sm:$0xff] %v378_v32   ;;  %v453_v34 = vpop.f32.mrb[4].mxu0 }
  0xe8   :  { %414 = vst [vmem:[#allocation2 + $0x28] sm:$0xff] %v398_v33   ;;  %v465_v35 = vpop.f32.mrb[4].mxu1  ;;  %v167_v36 = vpop.f32.mrb[5].mxu0 }
  0xe9   :  { %v207_v37 = vpop.f32.mrb[5].mxu1  ;;  %v383_v38 = vpack.c.bf16 %v453_v34, %v167_v36 }
  0xea   :  { %v403_v39 = vpack.c.bf16 %v465_v35, %v207_v37 }
  0xeb   :  { %411 = vst [vmem:[#allocation2 + $0x10] sm:$0xff] %v383_v38   ;;  %v456_v40 = vpop.f32.mrb[6].mxu0 }
  0xec   :  { %415 = vst [vmem:[#allocation2 + $0x30] sm:$0xff] %v403_v39   ;;  %v468_v41 = vpop.f32.mrb[6].mxu1  ;;  %v177_v42 = vpop.f32.mrb[7].mxu0 }
  0xed   :  { %v217_v43 = vpop.f32.mrb[7].mxu1  ;;  %v388_v44 = vpack.c.bf16 %v456_v40, %v177_v42 }
  0xee   :  { %v408_v45 = vpack.c.bf16 %v468_v41, %v217_v43 }
  0xef   :  { %412 = vst [vmem:[#allocation2 + $0x18] sm:$0xff] %v388_v44  }
  0xf0   :  { %416 = vst [vmem:[#allocation2 + $0x38] sm:$0xff] %v408_v45  }
  0xf1   :  { %495 = shalt.err (!%p492_p4)
}
  0xf2   :  { %s496_s23 = scalar_lea.hbm %s616_s2, 1024 }
  0xf3   :  { %p497_p5 = scmp.ne.s32.totalorder %s616_s2, %s496_s23  ;;  %p500_p6 = scmp.lt.u32.totalorder %s496_s23, %s616_s2 }
  0xf5   :  { %p502_p7 = pnand %p500_p6, %p497_p5 }
  0xf7   :  { %505 = shalt.err (!%p502_p7)
}
  0xf8   :  { %s509_s28 = smov 64   ;;  %s510_s29 = smov 4  }
  0xf9   :  { %317 = dma.vmem_to_hbm [thread:$0]  %s312_s20, 1024, %s616_s2, [#allocation3], %s509_s28, %s509_s28, %s510_s29  }
  0xfa   :  { %506 = dma.done.wait [#allocation3], 1024  }
  0xfb   :  { %507 = vsyncadd [#allocation3], 4294966272 }
  0xfc   :  { %321 = vsyncpa [#allocation3], 1 }

</bundles_post_ra>
